<compile_context>
chip_gen: v6e
topology: v6e:2x2x1
jax: 0.10.0
libtpu: 0.0.40
codegen_flags: <defaults>
</compile_context>

<pallas_src>
import functools

import jax
import jax.numpy as jnp
import numpy as np
from jax import lax
from jax.experimental import pallas as pl
from jax.experimental.pallas import tpu as pltpu


def _round_up(a, b):
    return (a + b - 1) // b * b


# ----------------------------------------------------------------------------
# Fused WaveUNet kernel (one L-tile at base rate L/4 per grid step)
# ----------------------------------------------------------------------------
def _waveunet_kernel(x_ref, halo_ref, w_enc0_ref, w_enc1_ref, w_dec0_ref,
                     w_dec1_ref, bias_ref, o_ref, *, T, T4):
    # x_ref    : (1, 4, T)    input phases p_r[j] = x[4j+r], tile t
    # halo_ref : (1, 1, 4, 8) [left 4 | right 4] halo columns for this tile
    # w_enc0   : (32, 8)      stacked enc0 taps -> q0||q1
    # w_enc1   : (32, 80)     stacked enc1 taps
    # w_dec0   : (32, 96)     stacked dec0 taps -> r0||r1
    # w_dec1   : (4, 64)      stacked dec1 taps -> 4 output phases
    # bias_ref : (32, 4)      cols = [b1||b1, b2, b3||b3, b4*ones]
    # o_ref    : (1, 4, T)    output phases s_r[j] = y[4j+r]
    t = pl.program_id(1)
    b = t * T                                    # global tile start (rate L/4)
    Tq, Tx, Tr = T + 6, T + 4, T + 2

    # Input window covering global base indices [b-4, b+T+4).
    halo = halo_ref[0, 0]                                            # (4, 8)
    W = jnp.concatenate([halo[:, 0:4], x_ref[0], halo[:, 4:8]], axis=1)  # (4,T+8)

    w0 = w_enc0_ref[...]
    w1 = w_enc1_ref[...]
    w2 = w_dec0_ref[...]
    w3 = w_dec1_ref[...]
    B = bias_ref[...]
    b1s, b2, b3s, b4 = B[:, 0:1], B[:, 1:2], B[:, 2:3], B[0:1, 3:4]

    def dotf(a, x):
        return jnp.dot(a, x, preferred_element_type=jnp.float32)

    # ---- enc0: Conv1d(1,16,k5,s2,p2) -> both x1 phases in one MXU dot ------
    # A0 rows: [P2@0, P3@0, P0@1, P1@1, P2@1, P3@1, P0@2, P1@2]; the last row
    # only exists to make K=8 and carries zero weight.
    A0 = jnp.concatenate([W[2:4, 0:Tq], W[0:4, 1:1 + Tq], W[0:2, 2:2 + Tq]],
                         axis=0)                                     # (8, Tq)
    Z0 = dotf(w0, A0) + b1s                                          # (32, Tq)

    def tail(masked):
        def act(z, width, off):
            z = jnp.maximum(z, 0.0)
            if masked:
                # Emulate Conv/ConvT zero padding: activations at base indices
                # outside [0, T4) must be exactly 0 (not relu(bias)).
                g = lax.broadcasted_iota(jnp.int32, (1, width), 1) + (b + off)
                z = jnp.where(jnp.logical_and(g >= 0, g < T4), z, 0.0)
            return z

        Q = act(Z0, Tq, -3)                           # (32,Tq) rows: q0 | q1

        # ---- enc1: Conv1d(16,32,k5,s2,p2) — one (32,80)@(80,Tx) dot --------
        A1 = jnp.concatenate([Q[:, 0:Tx], Q[:, 1:1 + Tx], Q[0:16, 2:2 + Tx]],
                             axis=0)                                 # (80, Tx)
        X2 = act(dotf(w1, A1) + b2, Tx, -2)                          # (32, Tx)

        # ---- dec0: ConvT1d(32,16,k5,s2,p2,op1) — one dot -> r0||r1 ---------
        A2 = jnp.concatenate([X2[:, 0:Tr], X2[:, 1:1 + Tr], X2[:, 2:2 + Tr]],
                             axis=0)                                 # (96, Tr)
        R = act(dotf(w2, A2) + b3s, Tr, -1)                          # (32, Tr)

        # ---- dec1: ConvT1d(16,1,k5,s2,p2,op1) — 4 output phases, one dot ---
        A3 = jnp.concatenate([R[16:32, 0:T], R[:, 1:1 + T], R[0:16, 2:2 + T]],
                             axis=0)                                 # (64, T)
        o_ref[0] = (dotf(w3, A3) + b4).astype(o_ref.dtype)

    # Interior fast path: masks are all-true unless the tile touches either
    # boundary of the real signal.
    interior = jnp.logical_and(b >= 4, b + T + 4 <= T4)

    @pl.when(interior)
    def _():
        tail(False)

    @pl.when(jnp.logical_not(interior))
    def _():
        tail(True)


# ----------------------------------------------------------------------------
# Wrapper: phase split / halo build / weight repack / pallas_call / interleave
# ----------------------------------------------------------------------------
def waveunet_forward(params, x, *, tile=1024):
    """x: (N, 1, L) with L % 4 == 0 -> (N, 1, L). PyTorch WaveUNet semantics."""
    N, C, L = x.shape
    assert C == 1
    # TODO(synk): L % 4 != 0 needs per-layer length bookkeeping (PyTorch itself
    # only round-trips back to length L when L % 4 == 0), so require it here.
    assert L % 4 == 0
    f32 = jnp.float32
    T4 = L // 4                                   # base rate length
    T = max(128, min(tile, _round_up(T4, 128)))   # lane-dense tile (mult of 128)
    n_tiles = -(-T4 // T)
    Tt = n_tiles * T

    # Input -> 4 phases at rate L/4, zero padded on the right up to Tt.
    # TODO(synk): this phase split (and the output interleave below) is one
    # extra HBM pass each; could be moved in-kernel if end-to-end HBM matters.
    ph = jnp.transpose(x[:, 0, :].reshape(N, T4, 4), (0, 2, 1))      # (N,4,T4)
    ph = jnp.pad(ph, ((0, 0), (0, 0), (0, Tt - T4)))                 # (N,4,Tt)

    # Per-tile 8-column halo: [last 4 cols of tile t-1 | first 4 cols of t+1],
    # zeros at the signal boundaries. Keeps kernel VMEM O(T) instead of O(L).
    pht = ph.reshape(N, 4, n_tiles, T)
    left = jnp.pad(pht[:, :, :-1, T - 4:], ((0, 0), (0, 0), (1, 0), (0, 0)))
    right = jnp.pad(pht[:, :, 1:, :4], ((0, 0), (0, 0), (0, 1), (0, 0)))
    halos = jnp.transpose(jnp.concatenate([left, right], axis=-1),
                          (0, 2, 1, 3))                              # (N,nt,4,8)

    # ---- stacked (pre-concatenated) weights, all tiny -----------------------
    # enc0: rows 0..15 -> q0, rows 16..31 -> q1; columns follow A0's row order.
    w1t = params["enc0_w"][:, 0, :].astype(f32)                      # (16, 5)
    w_enc0 = jnp.concatenate([
        jnp.concatenate([w1t, jnp.zeros((16, 3), f32)], axis=1),
        jnp.concatenate([jnp.zeros((16, 2), f32), w1t,
                         jnp.zeros((16, 1), f32)], axis=1)], axis=0)  # (32, 8)

    w2k = jnp.transpose(params["enc1_w"], (2, 0, 1))                 # (5,32,16)
    w_enc1 = jnp.concatenate([w2k[0], w2k[1], w2k[2], w2k[3], w2k[4]],
                             axis=1)                                 # (32, 80)

    w3k = jnp.transpose(params["dec0_w"], (2, 1, 0))                 # (5,16,32)
    zz = jnp.zeros((16, 32), f32)
    w_dec0 = jnp.concatenate([
        jnp.concatenate([w3k[4], w3k[2], w3k[0]], axis=1),           # -> r0
        jnp.concatenate([zz,     w3k[3], w3k[1]], axis=1)], axis=0)  # -> r1

    w4t = jnp.transpose(params["dec1_w"], (2, 1, 0))                 # (5, 1,16)
    z = jnp.zeros((1, 16), f32)
    blk0 = jnp.concatenate([w4t[4], z, z, z], axis=0)                # * r1[j-1]
    blk1 = jnp.concatenate([w4t[2], w4t[3], w4t[4], z], axis=0)      # * r0[j]
    blk2 = jnp.concatenate([w4t[0], w4t[1], w4t[2], w4t[3]], axis=0) # * r1[j]
    blk3 = jnp.concatenate([z, z, w4t[0], w4t[1]], axis=0)           # * r0[j+1]
    w_dec1 = jnp.concatenate([blk0, blk1, blk2, blk3], axis=1)       # (4, 64)

    biases = jnp.stack([
        jnp.concatenate([params["enc0_b"], params["enc0_b"]]),
        params["enc1_b"],
        jnp.concatenate([params["dec0_b"], params["dec0_b"]]),
        jnp.broadcast_to(params["dec1_b"], (32,)),
    ], axis=1).astype(f32)                                           # (32, 4)

    def const(shape):
        return pl.BlockSpec(shape, lambda n, t: (0,) * len(shape))

    out = pl.pallas_call(
        functools.partial(_waveunet_kernel, T=T, T4=T4),
        out_shape=jax.ShapeDtypeStruct((N, 4, Tt), jnp.float32),
        grid=(N, n_tiles),
        in_specs=[
            pl.BlockSpec((1, 4, T), lambda n, t: (n, 0, t)),          # main tile
            pl.BlockSpec((1, 1, 4, 8), lambda n, t: (n, t, 0, 0)),    # halo
            const((32, 8)), const((32, 80)), const((32, 96)),
            const((4, 64)), const((32, 4)),
        ],
        out_specs=pl.BlockSpec((1, 4, T), lambda n, t: (n, 0, t)),
        compiler_params=pltpu.CompilerParams(
            dimension_semantics=("parallel", "parallel")),
    )(ph, halos, w_enc0, w_enc1, w_dec0, w_dec1, biases)

    # (N, 4, Tt) output phases -> interleave -> (N, 1, 4*Tt) -> crop to L.
    y = jnp.transpose(out, (0, 2, 1)).reshape(N, 1, 4 * Tt)
    return y[:, :, :L]


# ----------------------------------------------------------------------------
# Params (PyTorch default init ranges) and pure-JAX reference
# ----------------------------------------------------------------------------
def init_params(key):
    ks = jax.random.split(key, 8)

    def u(k, shape, fan_in):
        bound = 1.0 / np.sqrt(fan_in)
        return jax.random.uniform(k, shape, jnp.float32, -bound, bound)

    return {
        # encoder: Conv1d(1,16,k5,s2,p2), Conv1d(16,32,k5,s2,p2)
        "enc0_w": u(ks[0], (16, 1, 5), 1 * 5),
        "enc0_b": u(ks[1], (16,), 1 * 5),
        "enc1_w": u(ks[2], (32, 16, 5), 16 * 5),
        "enc1_b": u(ks[3], (32,), 16 * 5),
        # decoder: ConvT1d(32,16,k5,s2,p2,op1), ConvT1d(16,1,k5,s2,p2,op1)
        "dec0_w": u(ks[4], (32, 16, 5), 16 * 5),
        "dec0_b": u(ks[5], (16,), 16 * 5),
        "dec1_w": u(ks[6], (16, 1, 5), 1 * 5),
        "dec1_b": u(ks[7], (1,), 1 * 5),
    }


def _ref_forward(params, x):
    dn = ("NCH", "OIH", "NCH")
    hi = lax.Precision.HIGHEST

    def conv(h, w, b, stride, pad):
        y = lax.conv_general_dilated(h, w, (stride,), [(pad, pad)],
                                     dimension_numbers=dn, precision=hi)
        return y + b[None, :, None]

    def convT(h, w, b, stride, pad, opad):
        k = w.shape[2]
        w_eq = jnp.transpose(w[:, :, ::-1], (1, 0, 2))
        y = lax.conv_general_dilated(
            h, w_eq, (1,), [(k - 1 - pad, k - 1 - pad + opad)],
            lhs_dilation=(stride,), dimension_numbers=dn, precision=hi)
        return y + b[None, :, None]

    h = jax.nn.relu(conv(x, params["enc0_w"], params["enc0_b"], 2, 2))
    h = jax.nn.relu(conv(h, params["enc1_w"], params["enc1_b"], 2, 2))
    h = jax.nn.relu(convT(h, params["dec0_w"], params["dec0_b"], 2, 2, 1))
    h = convT(h, params["dec1_w"], params["dec1_b"], 2, 2, 1)
    return h


if __name__ == "__main__":
    key = jax.random.PRNGKey(0)
    pkey, xkey = jax.random.split(key)
    params = init_params(pkey)

    # Small case (single tile, boundary/masked path).
    N, C, L = 2, 1, 64
    x = jax.random.normal(xkey, (N, C, L), jnp.float32)
    y = jax.block_until_ready(jax.jit(waveunet_forward)(params, x))
    assert y.shape == (N, 1, L), y.shape
    np.testing.assert_allclose(np.asarray(y), np.asarray(_ref_forward(params, x)),
                               rtol=2e-3, atol=2e-3)

    # Multi-tile case (exercises the halo plumbing and the interior fast path).
    x2 = jax.random.normal(jax.random.PRNGKey(1), (1, 1, 1536), jnp.float32)
    fwd_small_tile = jax.jit(functools.partial(waveunet_forward, tile=128))
    y2 = jax.block_until_ready(fwd_small_tile(params, x2))
    assert y2.shape == (1, 1, 1536), y2.shape
    np.testing.assert_allclose(np.asarray(y2),
                               np.asarray(_ref_forward(params, x2)),
                               rtol=2e-3, atol=2e-3)

    print("KERNEL_OK")
</pallas_src>

<mosaic_0001>
module attributes {stable_mosaic.version = 11 : i64} {
  func.func @_waveunet_kernel(%arg0: i32, %arg1: i32, %arg2: memref<1x4x128xf32, #tpu.memory_space<vmem>>, %arg3: memref<1x1x4x8xf32, #tpu.memory_space<vmem>>, %arg4: memref<32x8xf32, #tpu.memory_space<vmem>>, %arg5: memref<32x80xf32, #tpu.memory_space<vmem>>, %arg6: memref<32x96xf32, #tpu.memory_space<vmem>>, %arg7: memref<4x64xf32, #tpu.memory_space<vmem>>, %arg8: memref<32x4xf32, #tpu.memory_space<vmem>>, %arg9: memref<1x4x128xf32, #tpu.memory_space<vmem>>) attributes {dimension_semantics = [#tpu.dimension_semantics<parallel>, #tpu.dimension_semantics<parallel>], iteration_bounds = array<i64: 2, 1>, scalar_prefetch = 0 : i64, scratch_operands = 0 : i64, tpu.core_type = #tpu.core_type<tc>, window_params = [{transform_indices = @transform_0, window_bounds = array<i64: 1, 4, 128>}, {transform_indices = @transform_1, window_bounds = array<i64: 1, 1, 4, 8>}, {pipeline_mode = #tpu.pipeline_mode<synchronous>, transform_indices = @transform_2, window_bounds = array<i64: 32, 8>}, {pipeline_mode = #tpu.pipeline_mode<synchronous>, transform_indices = @transform_3, window_bounds = array<i64: 32, 80>}, {pipeline_mode = #tpu.pipeline_mode<synchronous>, transform_indices = @transform_4, window_bounds = array<i64: 32, 96>}, {pipeline_mode = #tpu.pipeline_mode<synchronous>, transform_indices = @transform_5, window_bounds = array<i64: 4, 64>}, {pipeline_mode = #tpu.pipeline_mode<synchronous>, transform_indices = @transform_6, window_bounds = array<i64: 32, 4>}, {transform_indices = @transform_7, window_bounds = array<i64: 1, 4, 128>}]} {
    %c128_i32 = arith.constant 128 : i32
    %0 = arith.muli %arg1, %c128_i32 : i32
    %c0 = arith.constant 0 : index
    %c0_0 = arith.constant 0 : index
    %c0_1 = arith.constant 0 : index
    %c0_2 = arith.constant 0 : index
    %1 = vector.load %arg3[%c0, %c0_0, %c0_1, %c0_2] : memref<1x1x4x8xf32, #tpu.memory_space<vmem>>, vector<1x1x4x8xf32>
    %2 = vector.shape_cast %1 : vector<1x1x4x8xf32> to vector<4x8xf32>
    %3 = vector.extract_strided_slice %2 {offsets = [0, 0], sizes = [4, 4], strides = [1, 1]} : vector<4x8xf32> to vector<4x4xf32>
    %c0_3 = arith.constant 0 : index
    %c0_4 = arith.constant 0 : index
    %c0_5 = arith.constant 0 : index
    %4 = vector.load %arg2[%c0_3, %c0_4, %c0_5] : memref<1x4x128xf32, #tpu.memory_space<vmem>>, vector<1x4x128xf32>
    %5 = vector.shape_cast %4 : vector<1x4x128xf32> to vector<4x128xf32>
    %6 = vector.extract_strided_slice %2 {offsets = [0, 4], sizes = [4, 4], strides = [1, 1]} : vector<4x8xf32> to vector<4x4xf32>
    %7 = tpu.concatenate %3, %5, %6 in 1 : vector<4x4xf32>, vector<4x128xf32>, vector<4x4xf32> -> vector<4x136xf32>
    %c0_6 = arith.constant 0 : index
    %c0_7 = arith.constant 0 : index
    %8 = vector.load %arg4[%c0_6, %c0_7] : memref<32x8xf32, #tpu.memory_space<vmem>>, vector<32x8xf32>
    %c0_8 = arith.constant 0 : index
    %c0_9 = arith.constant 0 : index
    %9 = vector.load %arg5[%c0_8, %c0_9] : memref<32x80xf32, #tpu.memory_space<vmem>>, vector<32x80xf32>
    %c0_10 = arith.constant 0 : index
    %c0_11 = arith.constant 0 : index
    %10 = vector.load %arg6[%c0_10, %c0_11] : memref<32x96xf32, #tpu.memory_space<vmem>>, vector<32x96xf32>
    %c0_12 = arith.constant 0 : index
    %c0_13 = arith.constant 0 : index
    %11 = vector.load %arg7[%c0_12, %c0_13] : memref<4x64xf32, #tpu.memory_space<vmem>>, vector<4x64xf32>
    %c0_14 = arith.constant 0 : index
    %c0_15 = arith.constant 0 : index
    %12 = vector.load %arg8[%c0_14, %c0_15] : memref<32x4xf32, #tpu.memory_space<vmem>>, vector<32x4xf32>
    %13 = vector.extract_strided_slice %12 {offsets = [0, 0], sizes = [32, 1], strides = [1, 1]} : vector<32x4xf32> to vector<32x1xf32>
    %14 = vector.extract_strided_slice %12 {offsets = [0, 1], sizes = [32, 1], strides = [1, 1]} : vector<32x4xf32> to vector<32x1xf32>
    %15 = vector.extract_strided_slice %12 {offsets = [0, 2], sizes = [32, 1], strides = [1, 1]} : vector<32x4xf32> to vector<32x1xf32>
    %16 = vector.extract_strided_slice %12 {offsets = [0, 3], sizes = [1, 1], strides = [1, 1]} : vector<32x4xf32> to vector<1x1xf32>
    %17 = vector.extract_strided_slice %7 {offsets = [2, 0], sizes = [2, 134], strides = [1, 1]} : vector<4x136xf32> to vector<2x134xf32>
    %18 = vector.extract_strided_slice %7 {offsets = [0, 1], sizes = [4, 134], strides = [1, 1]} : vector<4x136xf32> to vector<4x134xf32>
    %19 = vector.extract_strided_slice %7 {offsets = [0, 2], sizes = [2, 134], strides = [1, 1]} : vector<4x136xf32> to vector<2x134xf32>
    %20 = tpu.concatenate %17, %18, %19 in 0 : vector<2x134xf32>, vector<4x134xf32>, vector<2x134xf32> -> vector<8x134xf32>
    %cst = arith.constant dense<0.000000e+00> : vector<32x134xf32>
    %21 = tpu.matmul %8, %20, %cst {dimension_numbers = #tpu.dot_dimension_numbers<[1], [0], [0], [1], [0, 0, 1, 1], [], []>} : vector<32x8xf32>, vector<8x134xf32>, vector<32x134xf32> -> vector<32x134xf32>
    %22 = vector.broadcast %13 : vector<32x1xf32> to vector<32x134xf32>
    %23 = arith.addf %21, %22 : vector<32x134xf32>
    %c4_i32 = arith.constant 4 : i32
    %24 = arith.cmpi sge, %0, %c4_i32 : i32
    %c128_i32_16 = arith.constant 128 : i32
    %25 = arith.addi %0, %c128_i32_16 : i32
    %c4_i32_17 = arith.constant 4 : i32
    %26 = arith.addi %25, %c4_i32_17 : i32
    %c16_i32 = arith.constant 16 : i32
    %27 = arith.cmpi sle, %26, %c16_i32 : i32
    %28 = arith.andi %24, %27 : i1
    %29 = arith.extui %28 : i1 to i32
    %c0_i32 = arith.constant 0 : i32
    %30 = arith.cmpi ne, %29, %c0_i32 : i32
    scf.if %30 {
      %cst_19 = arith.constant 0.000000e+00 : f32
      %34 = vector.broadcast %cst_19 : f32 to vector<32x134xf32>
      %35 = arith.maximumf %23, %34 : vector<32x134xf32>
      %36 = vector.extract_strided_slice %35 {offsets = [0, 0], sizes = [32, 132], strides = [1, 1]} : vector<32x134xf32> to vector<32x132xf32>
      %37 = vector.extract_strided_slice %35 {offsets = [0, 1], sizes = [32, 132], strides = [1, 1]} : vector<32x134xf32> to vector<32x132xf32>
      %38 = vector.extract_strided_slice %35 {offsets = [0, 2], sizes = [16, 132], strides = [1, 1]} : vector<32x134xf32> to vector<16x132xf32>
      %39 = tpu.concatenate %36, %37, %38 in 0 : vector<32x132xf32>, vector<32x132xf32>, vector<16x132xf32> -> vector<80x132xf32>
      %cst_20 = arith.constant dense<0.000000e+00> : vector<32x132xf32>
      %40 = tpu.matmul %9, %39, %cst_20 {dimension_numbers = #tpu.dot_dimension_numbers<[1], [0], [0], [1], [0, 0, 1, 1], [], []>} : vector<32x80xf32>, vector<80x132xf32>, vector<32x132xf32> -> vector<32x132xf32>
      %41 = vector.broadcast %14 : vector<32x1xf32> to vector<32x132xf32>
      %42 = arith.addf %40, %41 : vector<32x132xf32>
      %cst_21 = arith.constant 0.000000e+00 : f32
      %43 = vector.broadcast %cst_21 : f32 to vector<32x132xf32>
      %44 = arith.maximumf %42, %43 : vector<32x132xf32>
      %45 = vector.extract_strided_slice %44 {offsets = [0, 0], sizes = [32, 130], strides = [1, 1]} : vector<32x132xf32> to vector<32x130xf32>
      %46 = vector.extract_strided_slice %44 {offsets = [0, 1], sizes = [32, 130], strides = [1, 1]} : vector<32x132xf32> to vector<32x130xf32>
      %47 = vector.extract_strided_slice %44 {offsets = [0, 2], sizes = [32, 130], strides = [1, 1]} : vector<32x132xf32> to vector<32x130xf32>
      %48 = tpu.concatenate %45, %46, %47 in 0 : vector<32x130xf32>, vector<32x130xf32>, vector<32x130xf32> -> vector<96x130xf32>
      %cst_22 = arith.constant dense<0.000000e+00> : vector<32x130xf32>
      %49 = tpu.matmul %10, %48, %cst_22 {dimension_numbers = #tpu.dot_dimension_numbers<[1], [0], [0], [1], [0, 0, 1, 1], [], []>} : vector<32x96xf32>, vector<96x130xf32>, vector<32x130xf32> -> vector<32x130xf32>
      %50 = vector.broadcast %15 : vector<32x1xf32> to vector<32x130xf32>
      %51 = arith.addf %49, %50 : vector<32x130xf32>
      %cst_23 = arith.constant 0.000000e+00 : f32
      %52 = vector.broadcast %cst_23 : f32 to vector<32x130xf32>
      %53 = arith.maximumf %51, %52 : vector<32x130xf32>
      %54 = vector.extract_strided_slice %53 {offsets = [16, 0], sizes = [16, 128], strides = [1, 1]} : vector<32x130xf32> to vector<16x128xf32>
      %55 = vector.extract_strided_slice %53 {offsets = [0, 1], sizes = [32, 128], strides = [1, 1]} : vector<32x130xf32> to vector<32x128xf32>
      %56 = vector.extract_strided_slice %53 {offsets = [0, 2], sizes = [16, 128], strides = [1, 1]} : vector<32x130xf32> to vector<16x128xf32>
      %57 = tpu.concatenate %54, %55, %56 in 0 : vector<16x128xf32>, vector<32x128xf32>, vector<16x128xf32> -> vector<64x128xf32>
      %cst_24 = arith.constant dense<0.000000e+00> : vector<4x128xf32>
      %58 = tpu.matmul %11, %57, %cst_24 {dimension_numbers = #tpu.dot_dimension_numbers<[1], [0], [0], [1], [0, 0, 1, 1], [], []>} : vector<4x64xf32>, vector<64x128xf32>, vector<4x128xf32> -> vector<4x128xf32>
      %59 = vector.broadcast %16 : vector<1x1xf32> to vector<4x128xf32>
      %60 = arith.addf %58, %59 : vector<4x128xf32>
      %c0_25 = arith.constant 0 : index
      %c0_26 = arith.constant 0 : index
      %c0_27 = arith.constant 0 : index
      %61 = vector.load %arg9[%c0_25, %c0_26, %c0_27] : memref<1x4x128xf32, #tpu.memory_space<vmem>>, vector<1x4x128xf32>
      %62 = vector.shape_cast %61 : vector<1x4x128xf32> to vector<4x128xf32>
      %63 = vector.shape_cast %60 : vector<4x128xf32> to vector<1x4x128xf32>
      tpu.vector_store %arg9[%c0_25, %c0_26, %c0_27], %63 {strides = array<i32>} : memref<1x4x128xf32, #tpu.memory_space<vmem>>, vector<1x4x128xf32>,
    } else {
    }
    %true = arith.constant true
    %31 = arith.xori %28, %true : i1
    %32 = arith.extui %31 : i1 to i32
    %c0_i32_18 = arith.constant 0 : i32
    %33 = arith.cmpi ne, %32, %c0_i32_18 : i32
    scf.if %33 {
      %cst_19 = arith.constant 0.000000e+00 : f32
      %34 = vector.broadcast %cst_19 : f32 to vector<32x134xf32>
      %35 = arith.maximumf %23, %34 : vector<32x134xf32>
      %36 = tpu.iota {dimensions = array<i32: 1>} : vector<1x134xi32>
      %c-3_i32 = arith.constant -3 : i32
      %37 = arith.addi %0, %c-3_i32 : i32
      %38 = vector.broadcast %37 : i32 to vector<1x134xi32>
      %39 = arith.addi %36, %38 : vector<1x134xi32>
      %c0_i32_20 = arith.constant 0 : i32
      %40 = vector.broadcast %c0_i32_20 : i32 to vector<1x134xi32>
      %41 = arith.cmpi sge, %39, %40 : vector<1x134xi32>
      %c16_i32_21 = arith.constant 16 : i32
      %42 = vector.broadcast %c16_i32_21 : i32 to vector<1x134xi32>
      %43 = arith.cmpi slt, %39, %42 : vector<1x134xi32>
      %44 = arith.andi %41, %43 : vector<1x134xi1>
      %cst_22 = arith.constant 0.000000e+00 : f32
      %45 = vector.shape_cast %44 : vector<1x134xi1> to vector<1x134xi1>
      %46 = vector.broadcast %45 : vector<1x134xi1> to vector<32x134xi1>
      %47 = vector.broadcast %cst_22 : f32 to vector<32x134xf32>
      %48 = arith.select %46, %35, %47 : vector<32x134xi1>, vector<32x134xf32>
      %49 = vector.extract_strided_slice %48 {offsets = [0, 0], sizes = [32, 132], strides = [1, 1]} : vector<32x134xf32> to vector<32x132xf32>
      %50 = vector.extract_strided_slice %48 {offsets = [0, 1], sizes = [32, 132], strides = [1, 1]} : vector<32x134xf32> to vector<32x132xf32>
      %51 = vector.extract_strided_slice %48 {offsets = [0, 2], sizes = [16, 132], strides = [1, 1]} : vector<32x134xf32> to vector<16x132xf32>
      %52 = tpu.concatenate %49, %50, %51 in 0 : vector<32x132xf32>, vector<32x132xf32>, vector<16x132xf32> -> vector<80x132xf32>
      %cst_23 = arith.constant dense<0.000000e+00> : vector<32x132xf32>
      %53 = tpu.matmul %9, %52, %cst_23 {dimension_numbers = #tpu.dot_dimension_numbers<[1], [0], [0], [1], [0, 0, 1, 1], [], []>} : vector<32x80xf32>, vector<80x132xf32>, vector<32x132xf32> -> vector<32x132xf32>
      %54 = vector.broadcast %14 : vector<32x1xf32> to vector<32x132xf32>
      %55 = arith.addf %53, %54 : vector<32x132xf32>
      %cst_24 = arith.constant 0.000000e+00 : f32
      %56 = vector.broadcast %cst_24 : f32 to vector<32x132xf32>
      %57 = arith.maximumf %55, %56 : vector<32x132xf32>
      %58 = tpu.iota {dimensions = array<i32: 1>} : vector<1x132xi32>
      %c-2_i32 = arith.constant -2 : i32
      %59 = arith.addi %0, %c-2_i32 : i32
      %60 = vector.broadcast %59 : i32 to vector<1x132xi32>
      %61 = arith.addi %58, %60 : vector<1x132xi32>
      %c0_i32_25 = arith.constant 0 : i32
      %62 = vector.broadcast %c0_i32_25 : i32 to vector<1x132xi32>
      %63 = arith.cmpi sge, %61, %62 : vector<1x132xi32>
      %c16_i32_26 = arith.constant 16 : i32
      %64 = vector.broadcast %c16_i32_26 : i32 to vector<1x132xi32>
      %65 = arith.cmpi slt, %61, %64 : vector<1x132xi32>
      %66 = arith.andi %63, %65 : vector<1x132xi1>
      %cst_27 = arith.constant 0.000000e+00 : f32
      %67 = vector.shape_cast %66 : vector<1x132xi1> to vector<1x132xi1>
      %68 = vector.broadcast %67 : vector<1x132xi1> to vector<32x132xi1>
      %69 = vector.broadcast %cst_27 : f32 to vector<32x132xf32>
      %70 = arith.select %68, %57, %69 : vector<32x132xi1>, vector<32x132xf32>
      %71 = vector.extract_strided_slice %70 {offsets = [0, 0], sizes = [32, 130], strides = [1, 1]} : vector<32x132xf32> to vector<32x130xf32>
      %72 = vector.extract_strided_slice %70 {offsets = [0, 1], sizes = [32, 130], strides = [1, 1]} : vector<32x132xf32> to vector<32x130xf32>
      %73 = vector.extract_strided_slice %70 {offsets = [0, 2], sizes = [32, 130], strides = [1, 1]} : vector<32x132xf32> to vector<32x130xf32>
      %74 = tpu.concatenate %71, %72, %73 in 0 : vector<32x130xf32>, vector<32x130xf32>, vector<32x130xf32> -> vector<96x130xf32>
      %cst_28 = arith.constant dense<0.000000e+00> : vector<32x130xf32>
      %75 = tpu.matmul %10, %74, %cst_28 {dimension_numbers = #tpu.dot_dimension_numbers<[1], [0], [0], [1], [0, 0, 1, 1], [], []>} : vector<32x96xf32>, vector<96x130xf32>, vector<32x130xf32> -> vector<32x130xf32>
      %76 = vector.broadcast %15 : vector<32x1xf32> to vector<32x130xf32>
      %77 = arith.addf %75, %76 : vector<32x130xf32>
      %cst_29 = arith.constant 0.000000e+00 : f32
      %78 = vector.broadcast %cst_29 : f32 to vector<32x130xf32>
      %79 = arith.maximumf %77, %78 : vector<32x130xf32>
      %80 = tpu.iota {dimensions = array<i32: 1>} : vector<1x130xi32>
      %c-1_i32 = arith.constant -1 : i32
      %81 = arith.addi %0, %c-1_i32 : i32
      %82 = vector.broadcast %81 : i32 to vector<1x130xi32>
      %83 = arith.addi %80, %82 : vector<1x130xi32>
      %c0_i32_30 = arith.constant 0 : i32
      %84 = vector.broadcast %c0_i32_30 : i32 to vector<1x130xi32>
      %85 = arith.cmpi sge, %83, %84 : vector<1x130xi32>
      %c16_i32_31 = arith.constant 16 : i32
      %86 = vector.broadcast %c16_i32_31 : i32 to vector<1x130xi32>
      %87 = arith.cmpi slt, %83, %86 : vector<1x130xi32>
      %88 = arith.andi %85, %87 : vector<1x130xi1>
      %cst_32 = arith.constant 0.000000e+00 : f32
      %89 = vector.shape_cast %88 : vector<1x130xi1> to vector<1x130xi1>
      %90 = vector.broadcast %89 : vector<1x130xi1> to vector<32x130xi1>
      %91 = vector.broadcast %cst_32 : f32 to vector<32x130xf32>
      %92 = arith.select %90, %79, %91 : vector<32x130xi1>, vector<32x130xf32>
      %93 = vector.extract_strided_slice %92 {offsets = [16, 0], sizes = [16, 128], strides = [1, 1]} : vector<32x130xf32> to vector<16x128xf32>
      %94 = vector.extract_strided_slice %92 {offsets = [0, 1], sizes = [32, 128], strides = [1, 1]} : vector<32x130xf32> to vector<32x128xf32>
      %95 = vector.extract_strided_slice %92 {offsets = [0, 2], sizes = [16, 128], strides = [1, 1]} : vector<32x130xf32> to vector<16x128xf32>
      %96 = tpu.concatenate %93, %94, %95 in 0 : vector<16x128xf32>, vector<32x128xf32>, vector<16x128xf32> -> vector<64x128xf32>
      %cst_33 = arith.constant dense<0.000000e+00> : vector<4x128xf32>
      %97 = tpu.matmul %11, %96, %cst_33 {dimension_numbers = #tpu.dot_dimension_numbers<[1], [0], [0], [1], [0, 0, 1, 1], [], []>} : vector<4x64xf32>, vector<64x128xf32>, vector<4x128xf32> -> vector<4x128xf32>
      %98 = vector.broadcast %16 : vector<1x1xf32> to vector<4x128xf32>
      %99 = arith.addf %97, %98 : vector<4x128xf32>
      %c0_34 = arith.constant 0 : index
      %c0_35 = arith.constant 0 : index
      %c0_36 = arith.constant 0 : index
      %100 = vector.load %arg9[%c0_34, %c0_35, %c0_36] : memref<1x4x128xf32, #tpu.memory_space<vmem>>, vector<1x4x128xf32>
      %101 = vector.shape_cast %100 : vector<1x4x128xf32> to vector<4x128xf32>
      %102 = vector.shape_cast %99 : vector<4x128xf32> to vector<1x4x128xf32>
      tpu.vector_store %arg9[%c0_34, %c0_35, %c0_36], %102 {strides = array<i32>} : memref<1x4x128xf32, #tpu.memory_space<vmem>>, vector<1x4x128xf32>,
    } else {
    }
    return
  }
  func.func @transform_0(%arg0: i32, %arg1: i32) -> (i32, i32, i32) {
    %c0_i32 = arith.constant 0 : i32
    %c0_i32_0 = arith.constant 0 : i32
    return %arg0, %c0_i32, %arg1 : i32, i32, i32
  }
  func.func @transform_1(%arg0: i32, %arg1: i32) -> (i32, i32, i32, i32) {
    %c0_i32 = arith.constant 0 : i32
    %c0_i32_0 = arith.constant 0 : i32
    %c0_i32_1 = arith.constant 0 : i32
    return %arg0, %arg1, %c0_i32, %c0_i32_0 : i32, i32, i32, i32
  }
  func.func @transform_2(%arg0: i32, %arg1: i32) -> (i32, i32) {
    %c0_i32 = arith.constant 0 : i32
    %c0_i32_0 = arith.constant 0 : i32
    %c0_i32_1 = arith.constant 0 : i32
    return %c0_i32, %c0_i32_0 : i32, i32
  }
  func.func @transform_3(%arg0: i32, %arg1: i32) -> (i32, i32) {
    %c0_i32 = arith.constant 0 : i32
    %c0_i32_0 = arith.constant 0 : i32
    %c0_i32_1 = arith.constant 0 : i32
    return %c0_i32, %c0_i32_0 : i32, i32
  }
  func.func @transform_4(%arg0: i32, %arg1: i32) -> (i32, i32) {
    %c0_i32 = arith.constant 0 : i32
    %c0_i32_0 = arith.constant 0 : i32
    %c0_i32_1 = arith.constant 0 : i32
    return %c0_i32, %c0_i32_0 : i32, i32
  }
  func.func @transform_5(%arg0: i32, %arg1: i32) -> (i32, i32) {
    %c0_i32 = arith.constant 0 : i32
    %c0_i32_0 = arith.constant 0 : i32
    %c0_i32_1 = arith.constant 0 : i32
    return %c0_i32, %c0_i32_0 : i32, i32
  }
  func.func @transform_6(%arg0: i32, %arg1: i32) -> (i32, i32) {
    %c0_i32 = arith.constant 0 : i32
    %c0_i32_0 = arith.constant 0 : i32
    %c0_i32_1 = arith.constant 0 : i32
    return %c0_i32, %c0_i32_0 : i32, i32
  }
  func.func @transform_7(%arg0: i32, %arg1: i32) -> (i32, i32, i32) {
    %c0_i32 = arith.constant 0 : i32
    %c0_i32_0 = arith.constant 0 : i32
    return %arg0, %c0_i32, %arg1 : i32, i32, i32
  }
}

</mosaic_0001>

<bundles_post_ra>
// kernel: squeeze.22
= control target key start
LH: loop header
LB: loop body
LE: loop exit
PB: predicated region body
PF: predicated region fallthrough
CT: control target
= control target key end

     0   :  { %s131_s8 = smov 116   ;;  %s132_s9 = smov 120   ;;  %vm8_vm0 = vcmask 31744   ;;  %s222_s0 = inlined_call_operand.vmem [shape: f32[2,64], index: 0, kind: input, shape index: {}]   ;;  %s223_s1 = inlined_call_operand.vmem [shape: f32[2,16,4], index: 1, kind: output, shape index: {}]  }
   0x1   :  { %v5_v0 = vld [vmem:[%s222_s0] sm:$0x3]  ;;  %s130_s0 = smov 124   ;;  %s133_s10 = smov 112  }
   0x2   :  { %6 = vst [vmem:[#allocation0] sm:$0x3] %v5_v0  ;;  %s134_s11 = smov 108   ;;  %s135_s12 = smov 104  }
   0x3   :  { %s136_s13 = smov 100   ;;  %s137_s14 = smov 96  }
   0x4   :  { %s138_s17 = smov 92   ;;  %s139_s18 = smov 88  }
   0x5   :  { %s140_s19 = smov 84   ;;  %s141_s20 = smov 80  }
   0x6   :  { %s142_s21 = smov 76   ;;  %s143_s22 = smov 72  }
   0x7   :  { %s144_s23 = smov 68  }
   0x9   :  { %v10_v1 = vld [vmem:[#allocation0] sm:$0x3]  }
   0xa   :  { %v22_v2 = vld [vmem:[#allocation0] sm:$0x3]   ;;  %11 = vrot.lane.b32.xlu0 %v10_v1, %s130_s0 }
   0xb   :  { %23 = vrot.lane.b32.xlu1 %v22_v2, %s131_s8  ;;  %v16_v3 = vld [vmem:[#allocation0] sm:$0x3]  }
   0xc   :  { %v28_v4 = vld [vmem:[#allocation0] sm:$0x3]  }
   0xd   :  { %v34_v5 = vld [vmem:[#allocation0] sm:$0x3]  }
   0xe   :  { %17 = vrot.lane.b32.xlu0 %v16_v3, %s132_s9  ;;  %v40_v6 = vld [vmem:[#allocation0] sm:$0x3]  }
   0xf   :  { %29 = vrot.lane.b32.xlu1 %v28_v4, %s133_s10  ;;  %v46_v7 = vld [vmem:[#allocation0] sm:$0x3]  }
  0x10   :  { %v52_v8 = vld [vmem:[#allocation0] sm:$0x3]  }
  0x11   :  { %v58_v9 = vld [vmem:[#allocation0] sm:$0x3]  }
  0x12   :  { %35 = vrot.lane.b32.xlu0 %v34_v5, %s134_s11  ;;  %v64_v10 = vld [vmem:[#allocation0] sm:$0x3]  }
  0x13   :  { %41 = vrot.lane.b32.xlu1 %v40_v6, %s135_s12  ;;  %v7_v11 = vld [vmem:[#allocation0] sm:$0x3]  }
  0x14   :  { %9 = vst.msk [vmem:[%s223_s1] ss:$16 sm:$0x3] %vm8_vm0, %v7_v11   ;;  %v70_v12 = vld [vmem:[#allocation0] sm:$0x3]  }
  0x15   :  { %v76_v13 = vld [vmem:[#allocation0] sm:$0x3]  }
  0x16   :  { %47 = vrot.lane.b32.xlu0 %v46_v7, %s136_s13  ;;  %v82_v14 = vld [vmem:[#allocation0] sm:$0x3]  }
  0x17   :  { %53 = vrot.lane.b32.xlu1 %v52_v8, %s137_s14  ;;  %v88_v15 = vld [vmem:[#allocation0] sm:$0x3]  }
  0x18   :  { %v94_v16 = vld [vmem:[#allocation0] sm:$0x3]  }
  0x1a   :  { %59 = vrot.lane.b32.xlu0 %v58_v9, %s138_s17 }
  0x1b   :  { %65 = vrot.lane.b32.xlu1 %v64_v10, %s139_s18 }
  0x1e   :  { %71 = vrot.lane.b32.xlu0 %v70_v12, %s140_s19 }
  0x1f   :  { %77 = vrot.lane.b32.xlu1 %v76_v13, %s141_s20 }
  0x22   :  { %83 = vrot.lane.b32.xlu0 %v82_v14, %s142_s21 }
  0x23   :  { %89 = vrot.lane.b32.xlu1 %v88_v15, %s143_s22 }
  0x26   :  { %95 = vrot.lane.b32.xlu0 %v94_v16, %s144_s23 }
  0x7c   :  { %v12_v17 = vpop.permute.xlu0 %11  }
  0x7d   :  { %v24_v18 = vpop.permute.xlu1 %23   ;;  %100 = vst.msk [vmem:[%s223_s1 + $0x1] ss:$16 sm:$0x3] %vm8_vm0, %v12_v17  }
  0x7e   :  { %102 = vst.msk [vmem:[%s223_s1 + $0x3] ss:$16 sm:$0x3] %vm8_vm0, %v24_v18  }
  0x80   :  { %v18_v19 = vpop.permute.xlu0 %17  }
  0x81   :  { %v30_v20 = vpop.permute.xlu1 %29   ;;  %101 = vst.msk [vmem:[%s223_s1 + $0x2] ss:$16 sm:$0x3] %vm8_vm0, %v18_v19  }
  0x82   :  { %103 = vst.msk [vmem:[%s223_s1 + $0x4] ss:$16 sm:$0x3] %vm8_vm0, %v30_v20  }
  0x84   :  { %v36_v21 = vpop.permute.xlu0 %35  }
  0x85   :  { %v42_v22 = vpop.permute.xlu1 %41   ;;  %104 = vst.msk [vmem:[%s223_s1 + $0x5] ss:$16 sm:$0x3] %vm8_vm0, %v36_v21  }
  0x86   :  { %105 = vst.msk [vmem:[%s223_s1 + $0x6] ss:$16 sm:$0x3] %vm8_vm0, %v42_v22  }
  0x88   :  { %v48_v23 = vpop.permute.xlu0 %47  }
  0x89   :  { %v54_v24 = vpop.permute.xlu1 %53   ;;  %106 = vst.msk [vmem:[%s223_s1 + $0x7] ss:$16 sm:$0x3] %vm8_vm0, %v48_v23  }
  0x8a   :  { %107 = vst.msk [vmem:[%s223_s1 + $0x8] ss:$16 sm:$0x3] %vm8_vm0, %v54_v24  }
  0x8c   :  { %v60_v25 = vpop.permute.xlu0 %59  }
  0x8d   :  { %v66_v26 = vpop.permute.xlu1 %65   ;;  %108 = vst.msk [vmem:[%s223_s1 + $0x9] ss:$16 sm:$0x3] %vm8_vm0, %v60_v25  }
  0x8e   :  { %109 = vst.msk [vmem:[%s223_s1 + $0xa] ss:$16 sm:$0x3] %vm8_vm0, %v66_v26  }
  0x90   :  { %v72_v27 = vpop.permute.xlu0 %71  }
  0x91   :  { %v78_v28 = vpop.permute.xlu1 %77   ;;  %110 = vst.msk [vmem:[%s223_s1 + $0xb] ss:$16 sm:$0x3] %vm8_vm0, %v72_v27  }
  0x92   :  { %111 = vst.msk [vmem:[%s223_s1 + $0xc] ss:$16 sm:$0x3] %vm8_vm0, %v78_v28  }
  0x94   :  { %v84_v29 = vpop.permute.xlu0 %83  }
  0x95   :  { %v90_v30 = vpop.permute.xlu1 %89   ;;  %112 = vst.msk [vmem:[%s223_s1 + $0xd] ss:$16 sm:$0x3] %vm8_vm0, %v84_v29  }
  0x96   :  { %113 = vst.msk [vmem:[%s223_s1 + $0xe] ss:$16 sm:$0x3] %vm8_vm0, %v90_v30  }
  0x98   :  { %v96_v31 = vpop.permute.xlu0 %95  }
  0x99   :  { %114 = vst.msk [vmem:[%s223_s1 + $0xf] ss:$16 sm:$0x3] %vm8_vm0, %v96_v31  }

// kernel: waveunet_forward.1
= control target key start
LH: loop header
LB: loop body
LE: loop exit
PB: predicated region body
PF: predicated region fallthrough
CT: control target
= control target key end

     0   :  { %s1895_s24 = smov 0   ;;  %s1897_s25 = smov 0   ;;  %s2204_s0 = inlined_call_operand.vmem [shape: f32[2,4,128], index: 0, kind: input, shape index: {}]   ;;  %s2205_s1 = inlined_call_operand.vmem [shape: f32[2,1,4,8], index: 1, kind: input, shape index: {}]   ;;  %s2206_s2 = inlined_call_operand.vmem [shape: f32[32,8], index: 2, kind: input, shape index: {}]   ;;  %s2207_s3 = inlined_call_operand.vmem [shape: f32[32,80], index: 3, kind: input, shape index: {}]   ;;  %s2208_s4 = inlined_call_operand.vmem [shape: f32[32,96], index: 4, kind: input, shape index: {}]   ;;  %s2209_s5 = inlined_call_operand.vmem [shape: f32[4,64], index: 5, kind: input, shape index: {}]   ;;  %s2210_s6 = inlined_call_operand.vmem [shape: f32[32,4], index: 6, kind: input, shape index: {}]   ;;  %s2211_s7 = inlined_call_operand.vmem [shape: f32[2,4,128], index: 7, kind: output, shape index: {}]  }
   0x1   :  { %s1899_s26 = smov 0  }
   0x2 LB: > { %s29_s27 = sadd.s32 1, %s1840_s25  ;;  %p1680_p0 = scmp.ge.s32.totalorder %s1844_s26, 1  ;;  %s1844_s26 = sphi %s1899_s26, %s17_s26   ;;  %s1840_s25 = sphi %s1897_s25, %s2219_s25   ;;  %s1836_s24 = sphi %s1895_s24, %s2218_s24  }
   0x3   : > { %p31_p1 = scmp.ge.s32.totalorder %s29_s27, 2  ;;  %p269_p2 = scmp.lt.s32.totalorder %s1844_s26, 3 }
   0x5   : > { %s2221_s27 = smov (%p31_p1, %s29_s27), 0  ;;  %p270_p3 = pnand %p1680_p0, %p269_p2 }
   0x6   : > { %p312_p4 = scmp.lt.s32.totalorder (!%p270_p3), %s1836_s24, 1  ;;  %s1846_s9 = smov (!%p270_p3), 4  }
   0x7   : > { %273 = sbr.rel (%p270_p3) target bundleno = 1485 (0x5cd), region = 48  ;;  %s1848_s13 = smov (!%p270_p3), 127  }
   0x8   : > { %s1849_s14 = smov (!%p270_p3), 126  }
   0xc   : > { %s2223_s24 = smov (!%p312_p4, %s1836_s24), 1  ;;  %v1847_v1 = vmov 0.0   ;;  %vm340_vm0 = vcmask 31744   ;;  %v1932_v10 = vld [vmem:[%s2210_s6 + $0x8] sm:$0xff]  ;;  %v1937_v11 = vld [vmem:[%s2210_s6] sm:$0xff]  ;;  %v1850_v12 = vmov 0   ;;  %v1028_v31 = vlaneseq }
   0xd   : > { %s1913_s28 = sshll.u32 %s2223_s24, 2  ;;  %487 = vmatprep.mubr.f32.mxu0 %v1847_v1  ;;  %1196 = vmatprep.mubr.f32.mxu1 %v1847_v1  ;;  %v1944_v13 = vld [vmem:[%s2210_s6 + $0x18] sm:$0xff]  ;;  %v1950_v14 = vld [vmem:[%s2210_s6 + $0x10] sm:$0xff]  ;;  %vm372_vm1 = vcmask 1039360   ;;  %vm384_vm2 = vcmask 1041408   ;;  %vm380_vm3 = vcmask 1031168  }
   0xe   : > { %s318_s8 = scalar_lea.vmem %s2204_s0, %s1913_s28  ;;  %s325_s12 = scalar_lea.vmem %s2205_s1, %s1913_s28  ;;  %1781 = vset.pattern.permute.xlu1 %v1850_v12  ;;  %1782 = vset.pattern.permute.xlu0 %v1850_v12  ;;  %vm387_vm4 = vcmask 1045504   ;;  %v343_v24 = vld [vmem:[%s2206_s2] sm:$0xff]  ;;  %vm410_vm5 = vcmask 64512   ;;  %v344_v26 = vld [vmem:[%s2206_s2 + $0x8] sm:$0xff]  ;;  %v345_v27 = vld [vmem:[%s2206_s2 + $0x10] sm:$0xff]  ;;  %v1973_v33 = vand.u32 127, %v1028_v31 }
   0xf   : > { %v335_v0 = vld [vmem:[%s318_s8] sm:$0xf]  ;;  %v346_v28 = vld [vmem:[%s2206_s2 + $0x18] sm:$0xff]  ;;  %v1851_v59 = vmov 1   ;;  %vm1119_vm9 = vcmask 654336   ;;  %vm1331_vm13 = vcmask 785408   ;;  %s332_s17 = scalar_lea.vmem %s2211_s7, %s1913_s28 }
  0x10   : > { %337 = vrot.lane.b32.xlu0 %v335_v0, %s1846_s9  ;;  %v334_v2 = vld [vmem:[%s325_s12] sm:$0xf]  ;;  %v1033_v35 = vadd.s32 4294967293, %v1973_v33 }
  0x12   : > { %vm1035_vm6 = vcmp.ge.s32.totalorder %v1033_v35, 0  ;;  %vm1037_vm7 = vcmp.lt.s32.totalorder %v1033_v35, 16 }
  0x13   : > { %vm1978_vm8 = vmand %vm1035_vm6, %vm1037_vm7 }
  0x82   : > { %v338_v3 = vpop.permute.xlu0 %337 }
  0x83   : > { %v341_v4 = vsel %vm340_vm0, %v334_v2, %v338_v3  ;;  %v342_v5 = vsel %vm340_vm0, %v338_v3, %v334_v2 }
  0x84   : > { %v366_v6 = vrot.slane %v341_v4, 6  ;;  %v367_v7 = vrot.slane %v342_v5, 6  ;;  %v362_v8 = vrot.slane %v341_v4, 2  ;;  %v363_v9 = vrot.slane %v342_v5, 2 }
  0x86   : > { %370 = vrot.lane.b32.xlu1 %v367_v7, %s1848_s13  ;;  %368 = vrot.lane.b32.xlu0 %v366_v6, %s1848_s13 }
  0x8a   : > { %378 = vrot.lane.b32.xlu0 %v363_v9, %s1849_s14  ;;  %376 = vrot.lane.b32.xlu1 %v362_v8, %s1849_s14 }
  0x8e   : > { %397 = vperm.xlu1 %1781, %v1932_v10   ;;  %392 = vperm.xlu0 %1782, %v1937_v11  }
  0x92   : > { %407 = vperm.xlu1 %1781, %v1944_v13   ;;  %1793 = vset.pattern.permute.xlu0 %v1851_v59 }
  0x96   : > { %402 = vperm.xlu1 %1781, %v1950_v14  }
  0x9a   : > { %1784 = vrot.lane.b32.xlu1 %v1847_v1, %s1849_s14 }
  0x9b   : > { %1794 = vset.pattern.permute.xlu1 %v1851_v59 }
  0xf8   : > { %v371_v15 = vpop.permute.xlu1 %370  ;;  %v369_v16 = vpop.permute.xlu0 %368 }
  0xf9   : > { %v373_v17 = vsel %vm372_vm1, %v369_v16, %v371_v15  ;;  %v386_v18 = vsel %vm384_vm2, %v363_v9, %v371_v15 }
  0xfa   : > { %v385_v23 = vsel %vm384_vm2, %v362_v8, %v373_v17  ;;  %vm1853_vm2 = vmmov 0  }
  0xfc   : > { %v379_v19 = vpop.permute.xlu0 %378  ;;  %v377_v20 = vpop.permute.xlu1 %376 }
  0xfd   : > { %v381_v21 = vsel %vm380_vm3, %v377_v20, %v379_v19  ;;  %v389_v22 = vsel %vm387_vm4, %v386_v18, %v379_v19  ;;  %v347_v19 = vld [vmem:[%s2207_s3] sm:$0xff]  ;;  %v348_v20 = vld [vmem:[%s2207_s3 + $0x8] sm:$0xff] }
  0xfe   : > { %453 = vmatprep.subr.mxu0 %v389_v22  ;;  %v388_v25 = vsel %vm387_vm4, %v385_v23, %v381_v21  ;;  %v349_v21 = vld [vmem:[%s2207_s3 + $0x10] sm:$0xff]  ;;  %v350_v22 = vld [vmem:[%s2207_s3 + $0x18] sm:$0xff] }
  0xff   : > { %454 = vmatpush1.msra.mxu0 %v388_v25 }
 0x100   : > { %1684 = vmatmul.mubr.msk.f32.vlgmr.msra.gmra.mxu0 %vm410_vm5, %v343_v24 }
 0x101   : > { %493 = vmatprep.mubr.f32.mxu0 %v1847_v1 }
 0x104   : > { %1685 = vmatmul.mubr.msk.f32.gmra.mxu0 %vm410_vm5, %v344_v26 }
 0x105   : > { %499 = vmatprep.mubr.f32.mxu0 %v1847_v1 }
 0x108   : > { %1686 = vmatmul.mubr.msk.f32.gmra.mxu0 %vm410_vm5, %v345_v27  ;;  %v1231_v27 = vadd.s32 4294967294, %v1973_v33 }
 0x109   : > { %505 = vmatprep.mubr.f32.mxu0 %v1847_v1  ;;  %v398_v29 = vpop.permute.xlu1 %397  ;;  %v393_v37 = vpop.permute.xlu0 %392 }
 0x10a   : > { %vm1233_vm10 = vcmp.ge.s32.totalorder %v1231_v27, 0  ;;  %vm1235_vm11 = vcmp.lt.s32.totalorder %v1231_v27, 16 }
 0x10b   : > { %vm2055_vm12 = vmand %vm1233_vm10, %vm1235_vm11 }
 0x10c   : > { %1687 = vmatmul.mubr.msk.f32.gmra.mxu0 %vm410_vm5, %v346_v28 }
 0x10d   : > { %1408 = vmatprep.mubr.f32.mxu0 %v1847_v1  ;;  %v408_v30 = vpop.permute.xlu1 %407 }
 0x111   : > { %v403_v32 = vpop.permute.xlu1 %402 }
 0x115   : > { %v1785_v34 = vpop.permute.xlu1 %1784 }
 0x116   : > { %v1786_v36 = vunpack.i.l.bf16 %v1785_v34  ;;  %v1787_v61 = vunpack.i.h.bf16 %v1785_v34 }
 0x118   : > { %1144 = vmatprep.subr.mxu1 %v1786_v36 }
 0x1c0   : > { %v489_v38 = vpop.f32.mrf.mxu0 }
 0x1c1   : > { %v1976_v39 = vadd.f32 %v489_v38, %v393_v37 }
 0x1c2   : > { %v491_v40 = vpop.f32.mrf.mxu0 }
 0x1c3   : > { %v1020_v42 = vmax.f32 %v1976_v39, 0.0 }
 0x1c4   : > { %v495_v43 = vpop.f32.mrf.mxu0 }
 0x1c5   : > { %v1983_v44 = vadd.f32 %v495_v43, %v398_v29  ;;  %v1045_v45 = vsel %vm1978_vm8, %v1020_v42, 0.0 }
 0x1c6   : > { %v497_v46 = vpop.f32.mrf.mxu0  ;;  %1089 = vrot.lane.b32.xlu0 %v1045_v45, %s1849_s14 }
 0x1c7   : > { %v1022_v47 = vmax.f32 %v1983_v44, 0.0 }
 0x1c8   : > { %v501_v48 = vpop.f32.mrf.mxu0 }
 0x1c9   : > { %v502_v49 = vadd.f32 %v501_v48, %v403_v32  ;;  %v1047_v50 = vsel %vm1978_vm8, %v1022_v47, 0.0 }
 0x1ca   : > { %v503_v51 = vpop.f32.mrf.mxu0  ;;  %1093 = vrot.lane.b32.xlu0 %v1047_v50, %s1849_s14 }
 0x1cb   : > { %v1024_v52 = vmax.f32 %v502_v49, 0.0 }
 0x1cc   : > { %v507_v53 = vpop.f32.mrf.mxu0 }
 0x1cd   : > { %v508_v54 = vadd.f32 %v507_v53, %v408_v30  ;;  %v1049_v55 = vsel %vm1978_vm8, %v1024_v52, 0.0 }
 0x1ce   : > { %v509_v56 = vpop.f32.mrf.mxu0  ;;  %1069 = vrot.lane.b32.xlu1 %v1049_v55, %s1848_s13  ;;  %1789 = vrot.lane.b32.xlu0 %v1847_v1, %s1848_s13 }
 0x1cf   : > { %v1026_v57 = vmax.f32 %v508_v54, 0.0 }
 0x1d1   : > { %v1051_v58 = vsel %vm1978_vm8, %v1026_v57, 0.0 }
 0x1d2   : > { %1073 = vrot.lane.b32.xlu1 %v1051_v58, %s1848_s13  ;;  %1065 = vrot.lane.b32.xlu0 %v1047_v50, %s1848_s13 }
 0x1d6   : > { %1067 = vrot.lane.b32.xlu1 %v1847_v1, %s1848_s13  ;;  %1061 = vrot.lane.b32.xlu0 %v1045_v45, %s1848_s13 }
 0x1da   : > { %1063 = vrot.lane.b32.xlu1 %v1847_v1, %s1848_s13  ;;  %1116 = vperm.xlu0 %1793, %v1944_v13  }
 0x1de   : > { %1112 = vperm.xlu1 %1794, %v1950_v14   ;;  %1104 = vperm.xlu0 %1793, %v1937_v11  }
 0x1e2   : > { %1108 = vperm.xlu1 %1794, %v1932_v10   ;;  %1796 = vrot.lane.b32.xlu0 %v1847_v1, %s1849_s14 }
 0x1e6   : > { %1801 = vrot.lane.b32.xlu1 %v1847_v1, %s1849_s14 }
 0x238   : > { %v1090_v60 = vpop.permute.xlu0 %1089 }
 0x239   : > { %v1097_v0 = vsel %vm380_vm3, %v1090_v60, %v1787_v61 }
 0x23c   : > { %v1094_v62 = vpop.permute.xlu0 %1093 }
 0x23d   : > { %v1098_v63 = vsel %vm380_vm3, %v1094_v62, %v1786_v36 }
 0x23e   : > { %1145 = vmatpush1.msra.mxu1 %v1098_v63 }
 0x23f   : > { %1146 = vmatprep.subr.mxu1 %v1787_v61 }
 0x240   : > { %v1070_v2 = vpop.permute.xlu1 %1069  ;;  %1147 = vmatpush1.msra.mxu1 %v1097_v0  ;;  %v1790_v3 = vpop.permute.xlu0 %1789 }
 0x241   : > { %v1791_v4 = vunpack.i.l.bf16 %v1790_v3  ;;  %v1792_v5 = vunpack.i.h.bf16 %v1790_v3 }
 0x243   : > { %1148 = vmatprep.subr.mxu1 %v1791_v4  ;;  %v1079_v9 = vsel %vm372_vm1, %v1070_v2, %v1792_v5 }
 0x244   : > { %v1074_v6 = vpop.permute.xlu1 %1073  ;;  %v1066_v8 = vpop.permute.xlu0 %1065 }
 0x245   : > { %v1080_v7 = vsel %vm372_vm1, %v1074_v6, %v1791_v4 }
 0x246   : > { %1149 = vmatpush1.msra.mxu1 %v1080_v7 }
 0x247   : > { %1150 = vmatprep.subr.mxu1 %v1792_v5 }
 0x248   : > { %v1068_v12 = vpop.permute.xlu1 %1067  ;;  %1151 = vmatpush1.msra.mxu1 %v1079_v9  ;;  %v1062_v16 = vpop.permute.xlu0 %1061 }
 0x249   : > { %1152 = vmatprep.subr.mxu1 %v1068_v12  ;;  %v1078_v15 = vsel %vm372_vm1, %v1066_v8, %v1068_v12 }
 0x24a   : > { %1153 = vmatpush1.msra.mxu1 %v1078_v15 }
 0x24c   : > { %v1064_v17 = vpop.permute.xlu1 %1063 }
 0x24d   : > { %1154 = vmatprep.subr.mxu1 %v1064_v17  ;;  %v1077_v18 = vsel %vm372_vm1, %v1062_v16, %v1064_v17  ;;  %v351_v16 = vld [vmem:[%s2208_s4] sm:$0xff]  ;;  %v352_v17 = vld [vmem:[%s2208_s4 + $0x8] sm:$0xff] }
 0x24e   : > { %1155 = vmatpush1.msra.mxu1 %v1077_v18  ;;  %v353_v18 = vld [vmem:[%s2208_s4 + $0x10] sm:$0xff] }
 0x24f   : > { %1156 = vmatprep.subr.mxu1 %v1847_v1 }
 0x250   : > { %1697 = vmatpush1.msk.msra.mxu1 %vm1978_vm8, %v1026_v57 }
 0x251   : > { %1158 = vmatprep.subr.mxu1 %v1847_v1 }
 0x252   : > { %1698 = vmatpush1.msk.msra.mxu1 %vm1978_vm8, %v1024_v52  ;;  %v1852_v52 = vmov 2  }
 0x253   : > { %1160 = vmatprep.subr.mxu1 %v1847_v1  ;;  %1811 = vset.pattern.permute.xlu1 %v1852_v52 }
 0x254   : > { %1699 = vmatpush1.msk.msra.mxu1 %vm1978_vm8, %v1022_v47  ;;  %1810 = vset.pattern.permute.xlu0 %v1852_v52 }
 0x255   : > { %1162 = vmatprep.subr.mxu1 %v1847_v1  ;;  %v1117_v23 = vpop.permute.xlu0 %1116 }
 0x256   : > { %1700 = vmatpush1.msk.msra.mxu1 %vm1978_vm8, %v1020_v42 }
 0x257   : > { %1701 = vmatmul.mubr.msk.f32.vlgmr.msra.gmra.mxu1 %vm1119_vm9, %v347_v19  ;;  %1727 = vmatprep.subr.mxu1 %v1847_v1  ;;  %v354_v19 = vld [vmem:[%s2208_s4 + $0x18] sm:$0xff] }
 0x258   : > { %1202 = vmatprep.mubr.f32.mxu1 %v1847_v1 }
 0x259   : > { %v1105_v24 = vpop.permute.xlu0 %1104  ;;  %v1113_v28 = vpop.permute.xlu1 %1112 }
 0x25b   : > { %1702 = vmatmul.mubr.msk.f32.gmra.mxu1 %vm1119_vm9, %v348_v20  ;;  %v1443_v20 = vadd.s32 4294967295, %v1973_v33 }
 0x25c   : > { %1208 = vmatprep.mubr.f32.mxu1 %v1847_v1 }
 0x25d   : > { %v1797_v25 = vpop.permute.xlu0 %1796  ;;  %v1109_v32 = vpop.permute.xlu1 %1108  ;;  %vm1445_vm14 = vcmp.ge.s32.totalorder %v1443_v20, 0  ;;  %vm1447_vm15 = vcmp.lt.s32.totalorder %v1443_v20, 16 }
 0x25e   : > { %v1798_v26 = vunpack.i.l.bf16 %v1797_v25  ;;  %v1799_v57 = vunpack.i.h.bf16 %v1797_v25  ;;  %vm2145_vm0 = vmand %vm1445_vm14, %vm1447_vm15 }
 0x25f   : > { %1703 = vmatmul.mubr.msk.f32.gmra.mxu1 %vm1119_vm9, %v349_v21 }
 0x260   : > { %1214 = vmatprep.mubr.f32.mxu1 %v1847_v1  ;;  %1352 = vmatprep.subr.mxu0 %v1798_v26 }
 0x261   : > { %v1802_v53 = vpop.permute.xlu1 %1801 }
 0x262   : > { %v1803_v59 = vunpack.i.l.bf16 %v1802_v53  ;;  %v1804_v61 = vunpack.i.h.bf16 %v1802_v53 }
 0x263   : > { %1704 = vmatmul.mubr.msk.f32.gmra.mxu1 %vm1119_vm9, %v350_v22 }
 0x264   : > { %1743 = vmatprep.mubr.msk.f32.mxu1 %vm1853_vm2, %v1847_v1 }
 0x317   : > { %v1198_v29 = vpop.f32.mrf.mxu1 }
 0x318   : > { %v2053_v30 = vadd.f32 %v1198_v29, %v1105_v24 }
 0x319   : > { %v1200_v31 = vpop.f32.mrf.mxu1 }
 0x31a   : > { %v1221_v35 = vmax.f32 %v2053_v30, 0.0 }
 0x31b   : > { %v1204_v36 = vpop.f32.mrf.mxu1 }
 0x31c   : > { %v2060_v37 = vadd.f32 %v1204_v36, %v1109_v32  ;;  %v1243_v38 = vsel %vm2055_vm12, %v1221_v35, 0.0 }
 0x31d   : > { %v1206_v39 = vpop.f32.mrf.mxu1  ;;  %1287 = vrot.lane.b32.xlu0 %v1243_v38, %s1849_s14 }
 0x31e   : > { %v1223_v40 = vmax.f32 %v2060_v37, 0.0 }
 0x31f   : > { %v1210_v41 = vpop.f32.mrf.mxu1 }
 0x320   : > { %v2068_v42 = vadd.f32 %v1210_v41, %v1113_v28  ;;  %v1245_v43 = vsel %vm2055_vm12, %v1223_v40, 0.0 }
 0x321   : > { %v1212_v44 = vpop.f32.mrf.mxu1  ;;  %1291 = vrot.lane.b32.xlu0 %v1245_v43, %s1849_s14 }
 0x322   : > { %v1225_v45 = vmax.f32 %v2068_v42, 0.0 }
 0x323   : > { %v1216_v46 = vpop.f32.mrf.mxu1 }
 0x324   : > { %v2076_v47 = vadd.f32 %v1216_v46, %v1117_v23  ;;  %v1247_v48 = vsel %vm2055_vm12, %v1225_v45, 0.0 }
 0x325   : > { %v1218_v49 = vpop.f32.mrf.mxu1  ;;  %1295 = vrot.lane.b32.xlu1 %v1247_v48, %s1849_s14  ;;  %1806 = vrot.lane.b32.xlu0 %v1847_v1, %s1848_s13 }
 0x326   : > { %v1227_v50 = vmax.f32 %v2076_v47, 0.0 }
 0x328   : > { %v1249_v51 = vsel %vm2055_vm12, %v1227_v50, 0.0 }
 0x329   : > { %1299 = vrot.lane.b32.xlu1 %v1249_v51, %s1849_s14  ;;  %1263 = vrot.lane.b32.xlu0 %v1245_v43, %s1848_s13 }
 0x32d   : > { %1267 = vrot.lane.b32.xlu1 %v1247_v48, %s1848_s13  ;;  %1259 = vrot.lane.b32.xlu0 %v1243_v38, %s1848_s13 }
 0x331   : > { %1271 = vrot.lane.b32.xlu1 %v1249_v51, %s1848_s13  ;;  %1320 = vperm.xlu0 %1810, %v1932_v10  }
 0x335   : > { %1265 = vrot.lane.b32.xlu1 %v1847_v1, %s1848_s13  ;;  %1324 = vperm.xlu0 %1810, %v1950_v14  }
 0x339   : > { %1261 = vrot.lane.b32.xlu1 %v1847_v1, %s1848_s13  ;;  %1813 = vrot.lane.b32.xlu0 %v1847_v1, %s1849_s14 }
 0x33d   : > { %1316 = vperm.xlu1 %1811, %v1937_v11  }
 0x341   : > { %1328 = vperm.xlu1 %1811, %v1944_v13  }
 0x38f   : > { %v1288_v54 = vpop.permute.xlu0 %1287 }
 0x390   : > { %v1303_v0 = vsel %vm380_vm3, %v1288_v54, %v1804_v61 }
 0x393   : > { %v1292_v56 = vpop.permute.xlu0 %1291 }
 0x394   : > { %v1304_v13 = vsel %vm380_vm3, %v1292_v56, %v1803_v59 }
 0x397   : > { %v1296_v55 = vpop.permute.xlu1 %1295  ;;  %v1807_v63 = vpop.permute.xlu0 %1806 }
 0x398   : > { %v1305_v62 = vsel %vm380_vm3, %v1296_v55, %v1799_v57  ;;  %v1808_v14 = vunpack.i.l.bf16 %v1807_v63  ;;  %v1809_v2 = vunpack.i.h.bf16 %v1807_v63 }
 0x39b   : > { %v1300_v58 = vpop.permute.xlu1 %1299  ;;  %v1264_v5 = vpop.permute.xlu0 %1263 }
 0x39c   : > { %v1306_v60 = vsel %vm380_vm3, %v1300_v58, %v1798_v26 }
 0x39d   : > { %1353 = vmatpush1.msra.mxu0 %v1306_v60 }
 0x39e   : > { %1354 = vmatprep.subr.mxu0 %v1799_v57 }
 0x39f   : > { %1355 = vmatpush1.msra.mxu0 %v1305_v62  ;;  %v1268_v10 = vpop.permute.xlu1 %1267  ;;  %v1260_v9 = vpop.permute.xlu0 %1259 }
 0x3a0   : > { %1356 = vmatprep.subr.mxu0 %v1803_v59  ;;  %v1277_v6 = vsel %vm372_vm1, %v1268_v10, %v1809_v2 }
 0x3a1   : > { %1357 = vmatpush1.msra.mxu0 %v1304_v13 }
 0x3a2   : > { %1358 = vmatprep.subr.mxu0 %v1804_v61 }
 0x3a3   : > { %v1272_v3 = vpop.permute.xlu1 %1271  ;;  %1359 = vmatpush1.msra.mxu0 %v1303_v0 }
 0x3a4   : > { %v1278_v4 = vsel %vm372_vm1, %v1272_v3, %v1808_v14  ;;  %1360 = vmatprep.subr.mxu0 %v1808_v14  ;;  %v355_v14 = vld [vmem:[%s2209_s5] sm:$0xf] }
 0x3a5   : > { %1361 = vmatpush1.msra.mxu0 %v1278_v4 }
 0x3a6   : > { %1362 = vmatprep.subr.mxu0 %v1809_v2 }
 0x3a7   : > { %v1266_v7 = vpop.permute.xlu1 %1265  ;;  %1363 = vmatpush1.msra.mxu0 %v1277_v6 }
 0x3a8   : > { %v1276_v8 = vsel %vm372_vm1, %v1264_v5, %v1266_v7  ;;  %1364 = vmatprep.subr.mxu0 %v1266_v7 }
 0x3a9   : > { %1365 = vmatpush1.msra.mxu0 %v1276_v8 }
 0x3ab   : > { %v1262_v12 = vpop.permute.xlu1 %1261 }
 0x3ac   : > { %v1275_v15 = vsel %vm372_vm1, %v1260_v9, %v1262_v12  ;;  %1366 = vmatprep.subr.mxu0 %v1262_v12  ;;  %v1321_v24 = vpop.permute.xlu0 %1320 }
 0x3ad   : > { %1367 = vmatpush1.msra.mxu0 %v1275_v15 }
 0x3ae   : > { %1368 = vmatprep.subr.mxu0 %v1847_v1 }
 0x3af   : > { %1705 = vmatpush1.msk.msra.mxu0 %vm2055_vm12, %v1227_v50 }
 0x3b0   : > { %1370 = vmatprep.subr.mxu0 %v1847_v1  ;;  %v1325_v32 = vpop.permute.xlu0 %1324 }
 0x3b1   : > { %1706 = vmatpush1.msk.msra.mxu0 %vm2055_vm12, %v1225_v45 }
 0x3b2   : > { %1372 = vmatprep.subr.mxu0 %v1847_v1 }
 0x3b3   : > { %1707 = vmatpush1.msk.msra.mxu0 %vm2055_vm12, %v1223_v40 }
 0x3b4   : > { %1374 = vmatprep.subr.mxu0 %v1847_v1  ;;  %v1814_v46 = vpop.permute.xlu0 %1813 }
 0x3b5   : > { %1708 = vmatpush1.msk.msra.mxu0 %vm2055_vm12, %v1221_v35  ;;  %v1815_v48 = vunpack.i.l.bf16 %v1814_v46  ;;  %v1816_v49 = vunpack.i.h.bf16 %v1814_v46 }
 0x3b6   : > { %1709 = vmatmul.mubr.msk.f32.vlgmr.msra.gmra.mxu0 %vm1331_vm13, %v351_v16 }
 0x3b7   : > { %1414 = vmatprep.mubr.f32.mxu0 %v1847_v1 }
 0x3b8   : > { %v1317_v21 = vpop.permute.xlu1 %1316 }
 0x3ba   : > { %1710 = vmatmul.mubr.msk.f32.gmra.mxu0 %vm1331_vm13, %v352_v17 }
 0x3bb   : > { %1420 = vmatprep.mubr.f32.mxu0 %v1847_v1 }
 0x3bc   : > { %v1329_v39 = vpop.permute.xlu1 %1328 }
 0x3be   : > { %1711 = vmatmul.mubr.msk.f32.gmra.mxu0 %vm1331_vm13, %v353_v18 }
 0x3bf   : > { %1426 = vmatprep.mubr.f32.mxu0 %v1847_v1 }
 0x3c2   : > { %1712 = vmatmul.mubr.msk.f32.gmra.mxu0 %vm1331_vm13, %v354_v19 }
 0x476   : > { %v1410_v22 = vpop.f32.mrf.mxu0 }
 0x477   : > { %v1411_v23 = vadd.f32 %v1410_v22, %v1317_v21 }
 0x478   : > { %v1412_v25 = vpop.f32.mrf.mxu0 }
 0x479   : > { %v1433_v27 = vmax.f32 %v1411_v23, 0.0 }
 0x47a   : > { %v1416_v28 = vpop.f32.mrf.mxu0 }
 0x47b   : > { %v1417_v29 = vadd.f32 %v1416_v28, %v1321_v24  ;;  %v1455_v30 = vsel %vm2145_vm0, %v1433_v27, 0.0 }
 0x47c   : > { %v1418_v31 = vpop.f32.mrf.mxu0  ;;  %1495 = vrot.lane.b32.xlu1 %v1455_v30, %s1849_s14 }
 0x47d   : > { %v1435_v33 = vmax.f32 %v1417_v29, 0.0 }
 0x47e   : > { %v1422_v34 = vpop.f32.mrf.mxu0 }
 0x47f   : > { %v1423_v35 = vadd.f32 %v1422_v34, %v1325_v32  ;;  %v1457_v36 = vsel %vm2145_vm0, %v1435_v33, 0.0 }
 0x480   : > { %v1424_v37 = vpop.f32.mrf.mxu0  ;;  %1499 = vrot.lane.b32.xlu1 %v1457_v36, %s1849_s14  ;;  %s1854_s14 = smov 125  }
 0x481   : > { %v1437_v38 = vmax.f32 %v1423_v35, 0.0 }
 0x482   : > { %v1428_v40 = vpop.f32.mrf.mxu0 }
 0x483   : > { %v1429_v41 = vadd.f32 %v1428_v40, %v1329_v39  ;;  %v1459_v42 = vsel %vm2145_vm0, %v1437_v38, 0.0 }
 0x484   : > { %v1430_v43 = vpop.f32.mrf.mxu0  ;;  %1479 = vrot.lane.b32.xlu0 %v1459_v42, %s1848_s13  ;;  %1818 = vrot.lane.b32.xlu1 %v1847_v1, %s1848_s13 }
 0x485   : > { %v1439_v44 = vmax.f32 %v1429_v41, 0.0 }
 0x487   : > { %v1461_v45 = vsel %vm2145_vm0, %v1439_v44, 0.0 }
 0x488   : > { %1483 = vrot.lane.b32.xlu0 %v1461_v45, %s1848_s13  ;;  %1475 = vrot.lane.b32.xlu1 %v1457_v36, %s1848_s13 }
 0x48c   : > { %1477 = vrot.lane.b32.xlu0 %v1847_v1, %s1848_s13  ;;  %1471 = vrot.lane.b32.xlu1 %v1455_v30, %s1848_s13 }
 0x490   : > { %1473 = vrot.lane.b32.xlu0 %v1847_v1, %s1848_s13  ;;  %1507 = vrot.lane.b32.xlu1 %v1937_v11, %s1854_s14 }
 0x4ee   : > { %v1496_v47 = vpop.permute.xlu1 %1495 }
 0x4ef   : > { %v1503_v52 = vsel %vm380_vm3, %v1496_v47, %v1816_v49 }
 0x4f2   : > { %v1500_v50 = vpop.permute.xlu1 %1499 }
 0x4f3   : > { %v1504_v51 = vsel %vm380_vm3, %v1500_v50, %v1815_v48  ;;  %vm1512_vm3 = vcmask 523264  }
 0x4f4   : > { %1728 = vmatpush3.msra.mxu1 %v1504_v51 }
 0x4f5   : > { %1729 = vmatprep.subr.mxu1 %v1847_v1 }
 0x4f6   : > { %v1480_v53 = vpop.permute.xlu0 %1479  ;;  %1730 = vmatpush3.msra.mxu1 %v1503_v52  ;;  %v1819_v54 = vpop.permute.xlu1 %1818 }
 0x4f7   : > { %v1820_v55 = vunpack.i.l.bf16 %v1819_v54  ;;  %1731 = vmatprep.subr.mxu1 %v1847_v1  ;;  %v1821_v56 = vunpack.i.h.bf16 %v1819_v54 }
 0x4f9   : > { %v1489_v59 = vsel %vm372_vm1, %v1480_v53, %v1821_v56 }
 0x4fa   : > { %v1484_v11 = vpop.permute.xlu0 %1483  ;;  %v1476_v57 = vpop.permute.xlu1 %1475 }
 0x4fb   : > { %v1490_v58 = vsel %vm372_vm1, %v1484_v11, %v1820_v55 }
 0x4fc   : > { %1732 = vmatpush3.msra.mxu1 %v1490_v58 }
 0x4fd   : > { %1733 = vmatprep.subr.mxu1 %v1847_v1 }
 0x4fe   : > { %v1478_v60 = vpop.permute.xlu0 %1477  ;;  %v1472_v61 = vpop.permute.xlu1 %1471  ;;  %1734 = vmatpush3.msra.mxu1 %v1489_v59 }
 0x4ff   : > { %v1488_v62 = vsel %vm372_vm1, %v1476_v57, %v1478_v60  ;;  %1735 = vmatprep.subr.mxu1 %v1847_v1 }
 0x500   : > { %1736 = vmatpush3.msra.mxu1 %v1488_v62 }
 0x501   : > { %1737 = vmatprep.subr.mxu1 %v1847_v1 }
 0x502   : > { %v1474_v63 = vpop.permute.xlu0 %1473  ;;  %v1508_v10 = vpop.permute.xlu1 %1507 }
 0x503   : > { %v1487_v13 = vsel %vm372_vm1, %v1472_v61, %v1474_v63  ;;  %1746 = vpush %v1508_v10 }
 0x504   : > { %1738 = vmatpush3.msra.mxu1 %v1487_v13 }
 0x505   : > { %1739 = vmatprep.subr.mxu1 %v1847_v1 }
 0x506   : > { %1740 = vmatpush3.msk.msra.mxu1 %vm2145_vm0, %v1439_v44 }
 0x507   : > { %1741 = vmatprep.subr.mxu1 %v1847_v1 }
 0x508   : > { %1742 = vmatpush3.msk.msra.mxu1 %vm2145_vm0, %v1437_v38 }
 0x509   : > { %1744 = vmatmul.mubr.msk.f32.vlgmr.msra.gmra.mxu1 %vm1512_vm3, %v355_v14 }
 0x534   : > { %s1747_s12 = spop %1746 }
 0x535   : > { %v1510_v0 = vstv %s1747_s12 }
 0x5c9   : > { %v1582_v2 = vpop.f32.mrf.mxu1 }
 0x5ca   : > { %v1583_v3 = vadd.f32 %v1582_v2, %v1510_v0 }
 0x5cb   : > { %v1745_v4 = vpop.f32.mrf.mxu1 }
 0x5cc   : > { %1586 = vst [vmem:[%s332_s17] sm:$0xf] %v1583_v3 }
 0x5cd PF: > { %s17_s26 = sadd.s32 1, %s1844_s26   ;;  %s2218_s24 = smov %s1840_s25 }
 0x5ce   : > { %p14_p5 = scmp.ge.s32.totalorder %s17_s26, 4   ;;  %s2219_s25 = smov %s2221_s27 }
 0x5d0   :  { %16 = sbr.rel (!%p14_p5) target bundleno = 2 (0x2), region = 89 }

</bundles_post_ra>
